<compile_context>
chip_gen: v7x
topology: tpu7x:2x2x1
jax: 0.10.0
libtpu: 0.0.40
codegen_flags: <defaults>
</compile_context>

<pallas_src>
from functools import partial

import jax
import jax.numpy as jnp
from jax import lax
from jax.experimental import pallas as pl
from jax.experimental.pallas import tpu as pltpu


def net_kernel(x_ref, w1_ref, b1_ref, w2t_ref, b2_ref, a_ref, o_ref, *, K, alpha):
    # dropout(p=0.5, training=False) is identity in eval mode -> omitted.

    # lin1 + relu:  h1 = relu(x @ W1 + b1)                         [N, H]
    h1 = jnp.dot(x_ref[...], w1_ref[...], preferred_element_type=jnp.float32)
    h1 = jnp.maximum(h1 + b1_ref[...], 0.0)

    # lin2, produced directly in transposed "classes on sublanes" layout:
    #   hT = W2^T @ h1^T + b2                                      [C, N]
    hT = lax.dot_general(
        w2t_ref[...], h1,
        dimension_numbers=(((1,), (1,)), ((), ())),   # contract both H dims (A @ B^T)
        preferred_element_type=jnp.float32,
    ) + b2_ref[...]

    # APPNP propagation in transposed form (A_hat symmetric):
    #   zT^(k+1) = zT^(k) @ [(1-alpha) * A_hat] + alpha * hT
    # Hoist the loop-invariant scalings; run the K dependent dots on the bf16 MXU
    # path with f32 accumulation.
    a_scaled = ((1.0 - alpha) * a_ref[...]).astype(jnp.bfloat16)
    ahT = alpha * hT

    zT = hT
    for _ in range(K):  # K is a compile-time constant -> fully unrolled
        zT = jnp.dot(zT.astype(jnp.bfloat16), a_scaled,
                     preferred_element_type=jnp.float32) + ahT

    # log_softmax over classes (axis 0 in the transposed layout)
    m = jnp.max(zT, axis=0, keepdims=True)
    s = zT - m
    lse = jnp.log(jnp.sum(jnp.exp(s), axis=0, keepdims=True))
    o_ref[...] = (s - lse).astype(o_ref.dtype)


def appnp_net_forward(x, w1, b1, w2, b2, a_hat, *, K, alpha):
    n, _ = x.shape
    c = w2.shape[1]
    kernel = partial(net_kernel, K=int(K), alpha=float(alpha))
    vmem = pl.BlockSpec(memory_space=pltpu.MemorySpace.VMEM)

    # Layout plumbing in the wrapper: W2 transposed to [C, H], biases as 2-D rows/cols.
    operands = (x, w1, b1.reshape(1, -1), w2.T, b2.reshape(-1, 1), a_hat)

    # Explicit VMEM budget: untiled resident operands + output, with headroom for the
    # bf16 A copy and intermediates; clamped to the v7x 64 MiB per-core ceiling.
    io_bytes = sum(int(o.size) * o.dtype.itemsize for o in operands) + n * c * 4
    vmem_limit = min(max(2 * io_bytes + (8 << 20), 16 << 20), 64 << 20)

    out_t = pl.pallas_call(
        kernel,
        out_shape=jax.ShapeDtypeStruct((c, n), jnp.float32),
        in_specs=[vmem] * 6,
        out_specs=vmem,
        compiler_params=pltpu.CompilerParams(vmem_limit_bytes=vmem_limit),
    )(*operands)
    # Kernel emits the lane-dense transposed [C, N] slab; transpose back outside.
    return out_t.T


def build_normalized_adjacency(edge_index, num_nodes):
    """Dense A_hat = D^{-1/2}(A + I)D^{-1/2} from a (2, E) edge_index (plain-JAX glue)."""
    row, col = edge_index[0], edge_index[1]
    a = jnp.zeros((num_nodes, num_nodes), jnp.float32)
    a = a.at[row, col].set(1.0)
    a = a.at[col, row].set(1.0)                        # treat graph as undirected
    eye = jnp.eye(num_nodes, dtype=bool)
    a = jnp.where(eye, 1.0, a)                         # self loops (idempotent if present)
    deg = jnp.sum(a, axis=1)
    d_inv_sqrt = jnp.where(deg > 0, 1.0 / jnp.sqrt(deg), 0.0)
    return a * d_inv_sqrt[:, None] * d_inv_sqrt[None, :]


if __name__ == "__main__":
    # Small synthetic "Cora-like" problem.
    N = 64            # number of nodes
    NUM_FEATURES = 32
    HIDDEN = 64
    NUM_CLASSES = 8
    NUM_EDGES = 128
    K = 10
    ALPHA = 0.1

    key = jax.random.PRNGKey(0)
    kx, ke, kw1, kb1, kw2, kb2 = jax.random.split(key, 6)

    # Node features.
    x = jax.random.normal(kx, (N, NUM_FEATURES), jnp.float32)

    # Random edge_index (2, E).
    edge_index = jax.random.randint(ke, (2, NUM_EDGES), 0, N, jnp.int32)
    a_hat = build_normalized_adjacency(edge_index, N)

    # Deterministic Linear params (uniform(-1/sqrt(fan_in), 1/sqrt(fan_in)) like torch).
    lim1 = 1.0 / jnp.sqrt(float(NUM_FEATURES))
    w1 = jax.random.uniform(kw1, (NUM_FEATURES, HIDDEN), jnp.float32, -lim1, lim1)
    b1 = jax.random.uniform(kb1, (HIDDEN,), jnp.float32, -lim1, lim1)
    lim2 = 1.0 / jnp.sqrt(float(HIDDEN))
    w2 = jax.random.uniform(kw2, (HIDDEN, NUM_CLASSES), jnp.float32, -lim2, lim2)
    b2 = jax.random.uniform(kb2, (NUM_CLASSES,), jnp.float32, -lim2, lim2)

    out = appnp_net_forward(x, w1, b1, w2, b2, a_hat, K=K, alpha=ALPHA)
    out = jax.block_until_ready(out)

    # Pure-JAX f32 reference check (tolerance relaxed for bf16 propagation matmuls).
    h_ref = jnp.maximum(x @ w1 + b1, 0.0)
    h_ref = h_ref @ w2 + b2
    z_ref = h_ref
    for _ in range(K):
        z_ref = (1.0 - ALPHA) * (a_hat @ z_ref) + ALPHA * h_ref
    ref = jax.nn.log_softmax(z_ref, axis=1)
    assert out.shape == (N, NUM_CLASSES)
    assert jnp.allclose(out, ref, atol=5e-2, rtol=5e-2), "mismatch vs JAX reference"

    print("KERNEL_OK")
</pallas_src>

<mosaic_0001>
module attributes {stable_mosaic.version = 11 : i64} {
  func.func @net_kernel(%arg0: memref<64x32xf32, #tpu.memory_space<vmem>>, %arg1: memref<32x64xf32, #tpu.memory_space<vmem>>, %arg2: memref<1x64xf32, #tpu.memory_space<vmem>>, %arg3: memref<8x64xf32, #tpu.memory_space<vmem>>, %arg4: memref<8x1xf32, #tpu.memory_space<vmem>>, %arg5: memref<64x64xf32, #tpu.memory_space<vmem>>, %arg6: memref<8x64xf32, #tpu.memory_space<vmem>>) attributes {dimension_semantics = [], scalar_prefetch = 0 : i64, scratch_operands = 0 : i64, tpu.core_type = #tpu.core_type<tc>} {
    %c0 = arith.constant 0 : index
    %c0_0 = arith.constant 0 : index
    %0 = vector.load %arg0[%c0, %c0_0] : memref<64x32xf32, #tpu.memory_space<vmem>>, vector<64x32xf32>
    %c0_1 = arith.constant 0 : index
    %c0_2 = arith.constant 0 : index
    %1 = vector.load %arg1[%c0_1, %c0_2] : memref<32x64xf32, #tpu.memory_space<vmem>>, vector<32x64xf32>
    %cst = arith.constant dense<0.000000e+00> : vector<64x64xf32>
    %2 = tpu.matmul %0, %1, %cst {dimension_numbers = #tpu.dot_dimension_numbers<[1], [0], [0], [1], [0, 0, 1, 1], [], []>} : vector<64x32xf32>, vector<32x64xf32>, vector<64x64xf32> -> vector<64x64xf32>
    %c0_3 = arith.constant 0 : index
    %c0_4 = arith.constant 0 : index
    %3 = vector.load %arg2[%c0_3, %c0_4] : memref<1x64xf32, #tpu.memory_space<vmem>>, vector<1x64xf32>
    %4 = vector.broadcast %3 : vector<1x64xf32> to vector<64x64xf32>
    %5 = arith.addf %2, %4 : vector<64x64xf32>
    %cst_5 = arith.constant 0.000000e+00 : f32
    %6 = vector.broadcast %cst_5 : f32 to vector<64x64xf32>
    %7 = arith.maximumf %5, %6 : vector<64x64xf32>
    %c0_6 = arith.constant 0 : index
    %c0_7 = arith.constant 0 : index
    %8 = vector.load %arg3[%c0_6, %c0_7] : memref<8x64xf32, #tpu.memory_space<vmem>>, vector<8x64xf32>
    %cst_8 = arith.constant dense<0.000000e+00> : vector<8x64xf32>
    %9 = tpu.matmul %8, %7, %cst_8 {dimension_numbers = #tpu.dot_dimension_numbers<[1], [1], [0], [0], [0, 0, 1, 0], [], []>} : vector<8x64xf32>, vector<64x64xf32>, vector<8x64xf32> -> vector<8x64xf32>
    %c0_9 = arith.constant 0 : index
    %c0_10 = arith.constant 0 : index
    %10 = vector.load %arg4[%c0_9, %c0_10] : memref<8x1xf32, #tpu.memory_space<vmem>>, vector<8x1xf32>
    %11 = vector.broadcast %10 : vector<8x1xf32> to vector<8x64xf32>
    %12 = arith.addf %9, %11 : vector<8x64xf32>
    %c0_11 = arith.constant 0 : index
    %c0_12 = arith.constant 0 : index
    %13 = vector.load %arg5[%c0_11, %c0_12] : memref<64x64xf32, #tpu.memory_space<vmem>>, vector<64x64xf32>
    %cst_13 = arith.constant 0.899999976 : f32
    %14 = vector.broadcast %cst_13 : f32 to vector<64x64xf32>
    %15 = arith.mulf %14, %13 : vector<64x64xf32>
    %16 = arith.truncf %15 : vector<64x64xf32> to vector<64x64xbf16>
    %cst_14 = arith.constant 1.000000e-01 : f32
    %17 = vector.broadcast %cst_14 : f32 to vector<8x64xf32>
    %18 = arith.mulf %17, %12 : vector<8x64xf32>
    %19 = arith.truncf %12 : vector<8x64xf32> to vector<8x64xbf16>
    %cst_15 = arith.constant dense<0.000000e+00> : vector<8x64xf32>
    %20 = tpu.matmul %19, %16, %cst_15 {dimension_numbers = #tpu.dot_dimension_numbers<[1], [0], [0], [1], [0, 0, 1, 1], [], []>} : vector<8x64xbf16>, vector<64x64xbf16>, vector<8x64xf32> -> vector<8x64xf32>
    %21 = arith.addf %20, %18 : vector<8x64xf32>
    %22 = arith.truncf %21 : vector<8x64xf32> to vector<8x64xbf16>
    %cst_16 = arith.constant dense<0.000000e+00> : vector<8x64xf32>
    %23 = tpu.matmul %22, %16, %cst_16 {dimension_numbers = #tpu.dot_dimension_numbers<[1], [0], [0], [1], [0, 0, 1, 1], [], []>} : vector<8x64xbf16>, vector<64x64xbf16>, vector<8x64xf32> -> vector<8x64xf32>
    %24 = arith.addf %23, %18 : vector<8x64xf32>
    %25 = arith.truncf %24 : vector<8x64xf32> to vector<8x64xbf16>
    %cst_17 = arith.constant dense<0.000000e+00> : vector<8x64xf32>
    %26 = tpu.matmul %25, %16, %cst_17 {dimension_numbers = #tpu.dot_dimension_numbers<[1], [0], [0], [1], [0, 0, 1, 1], [], []>} : vector<8x64xbf16>, vector<64x64xbf16>, vector<8x64xf32> -> vector<8x64xf32>
    %27 = arith.addf %26, %18 : vector<8x64xf32>
    %28 = arith.truncf %27 : vector<8x64xf32> to vector<8x64xbf16>
    %cst_18 = arith.constant dense<0.000000e+00> : vector<8x64xf32>
    %29 = tpu.matmul %28, %16, %cst_18 {dimension_numbers = #tpu.dot_dimension_numbers<[1], [0], [0], [1], [0, 0, 1, 1], [], []>} : vector<8x64xbf16>, vector<64x64xbf16>, vector<8x64xf32> -> vector<8x64xf32>
    %30 = arith.addf %29, %18 : vector<8x64xf32>
    %31 = arith.truncf %30 : vector<8x64xf32> to vector<8x64xbf16>
    %cst_19 = arith.constant dense<0.000000e+00> : vector<8x64xf32>
    %32 = tpu.matmul %31, %16, %cst_19 {dimension_numbers = #tpu.dot_dimension_numbers<[1], [0], [0], [1], [0, 0, 1, 1], [], []>} : vector<8x64xbf16>, vector<64x64xbf16>, vector<8x64xf32> -> vector<8x64xf32>
    %33 = arith.addf %32, %18 : vector<8x64xf32>
    %34 = arith.truncf %33 : vector<8x64xf32> to vector<8x64xbf16>
    %cst_20 = arith.constant dense<0.000000e+00> : vector<8x64xf32>
    %35 = tpu.matmul %34, %16, %cst_20 {dimension_numbers = #tpu.dot_dimension_numbers<[1], [0], [0], [1], [0, 0, 1, 1], [], []>} : vector<8x64xbf16>, vector<64x64xbf16>, vector<8x64xf32> -> vector<8x64xf32>
    %36 = arith.addf %35, %18 : vector<8x64xf32>
    %37 = arith.truncf %36 : vector<8x64xf32> to vector<8x64xbf16>
    %cst_21 = arith.constant dense<0.000000e+00> : vector<8x64xf32>
    %38 = tpu.matmul %37, %16, %cst_21 {dimension_numbers = #tpu.dot_dimension_numbers<[1], [0], [0], [1], [0, 0, 1, 1], [], []>} : vector<8x64xbf16>, vector<64x64xbf16>, vector<8x64xf32> -> vector<8x64xf32>
    %39 = arith.addf %38, %18 : vector<8x64xf32>
    %40 = arith.truncf %39 : vector<8x64xf32> to vector<8x64xbf16>
    %cst_22 = arith.constant dense<0.000000e+00> : vector<8x64xf32>
    %41 = tpu.matmul %40, %16, %cst_22 {dimension_numbers = #tpu.dot_dimension_numbers<[1], [0], [0], [1], [0, 0, 1, 1], [], []>} : vector<8x64xbf16>, vector<64x64xbf16>, vector<8x64xf32> -> vector<8x64xf32>
    %42 = arith.addf %41, %18 : vector<8x64xf32>
    %43 = arith.truncf %42 : vector<8x64xf32> to vector<8x64xbf16>
    %cst_23 = arith.constant dense<0.000000e+00> : vector<8x64xf32>
    %44 = tpu.matmul %43, %16, %cst_23 {dimension_numbers = #tpu.dot_dimension_numbers<[1], [0], [0], [1], [0, 0, 1, 1], [], []>} : vector<8x64xbf16>, vector<64x64xbf16>, vector<8x64xf32> -> vector<8x64xf32>
    %45 = arith.addf %44, %18 : vector<8x64xf32>
    %46 = arith.truncf %45 : vector<8x64xf32> to vector<8x64xbf16>
    %cst_24 = arith.constant dense<0.000000e+00> : vector<8x64xf32>
    %47 = tpu.matmul %46, %16, %cst_24 {dimension_numbers = #tpu.dot_dimension_numbers<[1], [0], [0], [1], [0, 0, 1, 1], [], []>} : vector<8x64xbf16>, vector<64x64xbf16>, vector<8x64xf32> -> vector<8x64xf32>
    %48 = arith.addf %47, %18 : vector<8x64xf32>
    %cst_25 = arith.constant dense<0xFF800000> : vector<64xf32>
    %49 = vector.multi_reduction <maximumf>, %48, %cst_25 [0] : vector<8x64xf32> to vector<64xf32>
    %50 = vector.shape_cast %49 : vector<64xf32> to vector<1x64xf32>
    %51 = vector.broadcast %50 : vector<1x64xf32> to vector<8x64xf32>
    %52 = arith.subf %48, %51 : vector<8x64xf32>
    %53 = math.exp %52 : vector<8x64xf32>
    %cst_26 = arith.constant dense<0.000000e+00> : vector<64xf32>
    %54 = vector.multi_reduction <add>, %53, %cst_26 [0] : vector<8x64xf32> to vector<64xf32>
    %55 = vector.shape_cast %54 : vector<64xf32> to vector<1x64xf32>
    %56 = math.log %55 : vector<1x64xf32>
    %57 = vector.broadcast %56 : vector<1x64xf32> to vector<8x64xf32>
    %58 = arith.subf %52, %57 : vector<8x64xf32>
    %c0_27 = arith.constant 0 : index
    %c0_28 = arith.constant 0 : index
    %59 = vector.load %arg6[%c0_27, %c0_28] : memref<8x64xf32, #tpu.memory_space<vmem>>, vector<8x64xf32>
    tpu.vector_store %arg6[%c0_27, %c0_28], %58 {strides = array<i32>} : memref<8x64xf32, #tpu.memory_space<vmem>>, vector<8x64xf32>,
    return
  }
}

</mosaic_0001>

<bundles_post_ra>
// kernel: tpu_custom_call.1
= control target key start
LH: loop header
LB: loop body
LE: loop exit
PB: predicated region body
PF: predicated region fallthrough
CT: control target
= control target key end

     0   :  { %vm44_vm0 = vcmask 261120   ;;  %s1382_s0 = inlined_call_operand.vmem [shape: f32[64,32], index: 0, kind: input, shape index: {}]   ;;  %s1383_s1 = inlined_call_operand.vmem [shape: f32[32,64], index: 1, kind: input, shape index: {}]   ;;  %s1384_s2 = inlined_call_operand.vmem [shape: f32[1,64], index: 2, kind: input, shape index: {}]   ;;  %s1385_s3 = inlined_call_operand.vmem [shape: f32[8,64], index: 3, kind: input, shape index: {}]   ;;  %s1386_s4 = inlined_call_operand.vmem [shape: f32[8,1], index: 4, kind: input, shape index: {}]   ;;  %s1387_s5 = inlined_call_operand.vmem [shape: f32[64,64], index: 5, kind: input, shape index: {}]   ;;  %s1388_s6 = inlined_call_operand.hbm [shape: f32[8,64], index: 6, kind: output, shape index: {}]  }
   0x1   :  { %v33_v0 = vld [vmem:[%s1383_s1] sm:$0xff]  ;;  %v34_v1 = vld [vmem:[%s1383_s1 + $0x8] sm:$0xff]  ;;  %v35_v2 = vld [vmem:[%s1383_s1 + $0x10] sm:$0xff] }
   0x2   :  { %v1041_v3 = vpack.c.bf16 %v34_v1, %v33_v0  ;;  %v36_v4 = vld [vmem:[%s1383_s1 + $0x18] sm:$0xff]  ;;  %v25_v5 = vld [vmem:[%s1382_s0] sm:$0xff] }
   0x3   :  { %v1045_v6 = vpack.c.bf16 %v36_v4, %v35_v2  ;;  %890 = vmatprep.mubr.msk.f32.mxu0 %vm44_vm0, %v25_v5 }
   0x4   :  { %1042 = vmatprep.subr.bf16.mxu0 %v1041_v3 }
   0x5   :  { %1044 = vmatpush3.bf16.msra.mxu0 %v1041_v3 }
   0x6   :  { %11 = vsyncpa [#allocation3], 0  ;;  %1046 = vmatprep.subr.bf16.mxu0 %v1045_v6  ;;  %v26_v7 = vld [vmem:[%s1382_s0 + $0x8] sm:$0xff]  ;;  %v27_v8 = vld [vmem:[%s1382_s0 + $0x10] sm:$0xff]  ;;  %v1099_v14 = vmov 0.0|0.0   ;;  %vm1100_vm1 = vmmov 0  }
   0x7   :  { %v28_v9 = vld [vmem:[%s1382_s0 + $0x18] sm:$0xff]  ;;  %v29_v10 = vld [vmem:[%s1382_s0 + $0x20] sm:$0xff]  ;;  %v30_v11 = vld [vmem:[%s1382_s0 + $0x28] sm:$0xff]  ;;  %1049 = vmatprep.subr.bf16.mxu1 %v1099_v14  ;;  %v1101_v15 = vmov 0.0   ;;  %v1102_v19 = vmov 0   ;;  %vm189_vm2 = vcmask 523264  }
   0x8   :  { %v31_v12 = vld [vmem:[%s1382_s0 + $0x30] sm:$0xff]  ;;  %v32_v13 = vld [vmem:[%s1382_s0 + $0x38] sm:$0xff]  ;;  %918 = vmatprep.mubr.msk.f32.mxu1 %vm1100_vm1, %v1101_v15  ;;  %v183_v16 = vld [vmem:[%s1386_s4] sm:$0xff]  ;;  %1070 = vset.pattern.permute.xlu0 %v1102_v19 }
   0x9   :  { %1048 = vmatpush3.bf16.msra.mxu0 %v1045_v6  ;;  %v287_v17 = vld [vmem:[%s1387_s5] sm:$0xff]  ;;  %v288_v18 = vld [vmem:[%s1387_s5 + $0x8] sm:$0xff]  ;;  %v289_v22 = vld [vmem:[%s1387_s5 + $0x10] sm:$0xff]  ;;  %186 = vperm.xlu0 %1070, %v183_v16  }
   0xa   :  { %921 = vmatprep.subr.bf16.mxu0 %v1101_v15  ;;  %v295_v20 = vmul.f32 0.9, %v287_v17  ;;  %v296_v21 = vmul.f32 0.9, %v288_v18  ;;  %v290_v23 = vld [vmem:[%s1387_s5 + $0x18] sm:$0xff]  ;;  %v291_v26 = vld [vmem:[%s1387_s5 + $0x20] sm:$0xff]  ;;  %vm1227_vm3 = vmpackc.low %vm189_vm2, %vm189_vm2 }
   0xb   :  { %v297_v24 = vmul.f32 0.9, %v289_v22  ;;  %v298_v25 = vmul.f32 0.9, %v290_v23  ;;  %v292_v27 = vld [vmem:[%s1387_s5 + $0x28] sm:$0xff]  ;;  %v182_v63 = vld [vmem:[%s1385_s3] sm:$0xff] }
   0xc   :  { %891 = vmatmul.mubr.msk.f32.vlgmr.msra.gmra.mrb[0].mxu0 %vm44_vm0, %v26_v7  ;;  %v1210_v28 = vpack.c.bf16 %v296_v21, %v295_v20  ;;  %v299_v30 = vmul.f32 0.9, %v291_v26  ;;  %v300_v31 = vmul.f32 0.9, %v292_v27  ;;  %v783_v33 = vld [vmem:[%s1384_s2] ss:$0 sm:$0xff] }
   0xd   :  { %893 = vmatprep.mubr.msk.f32.mxu0 %vm44_vm0, %v27_v8  ;;  %v1213_v29 = vpack.c.bf16 %v298_v25, %v297_v24  ;;  %v293_v0 = vld [vmem:[%s1387_s5 + $0x30] sm:$0xff]  ;;  %v294_v1 = vld [vmem:[%s1387_s5 + $0x38] sm:$0xff]  ;;  %s1103_s5 = smov [#allocation2]  }
   0xe   :  { %922 = vmatpush3.bf16.msra.mxu0 %v1210_v28  ;;  %v1217_v32 = vpack.c.bf16 %v300_v31, %v299_v30  ;;  %v301_v2 = vmul.f32 0.9, %v293_v0  ;;  %v302_v3 = vmul.f32 0.9, %v294_v1  ;;  %s775_s13 = sshll.u32 %s1103_s5, 4  ;;  %s776_s13 = int_to_ptr.vmem [resolvable:$true] %s775_s13 }
   0xf   :  { %923 = vmatprep.subr.bf16.mxu0 %v1101_v15  ;;  %s1075_s14 = scalar_lea.vmem %s776_s13, 128  ;;  %p1080_p1 = scmp.lt.s32.totalorder %s776_s13, %s776_s13 }
  0x10   :  { %894 = vmatmul.mubr.msk.f32.gmra.mrb[2].mxu0 %vm44_vm0, %v28_v9  ;;  %v1261_v4 = vpack.c.bf16 %v302_v3, %v301_v2  ;;  %p1076_p0 = scmp.ne.s32.totalorder %s776_s13, %s1075_s14  ;;  %p1081_p2 = scmp.lt.s32.totalorder %s1075_s14, %s1075_s14 }
  0x11   :  { %896 = vmatprep.mubr.msk.f32.mxu0 %vm44_vm0, %v29_v10 }
  0x12   :  { %924 = vmatpush3.bf16.msra.mxu0 %v1213_v29  ;;  %p1082_p3 = por %p1081_p2, %p1080_p1 }
  0x13   :  { %925 = vmatprep.subr.bf16.mxu0 %v1101_v15 }
  0x14   :  { %897 = vmatmul.mubr.msk.f32.gmra.mrb[4].mxu0 %vm44_vm0, %v30_v11  ;;  %p1083_p4 = pnand %p1082_p3, %p1076_p0 }
  0x15   :  { %899 = vmatprep.mubr.msk.f32.mxu0 %vm44_vm0, %v31_v12 }
  0x16   :  { %926 = vmatpush3.bf16.msra.mxu0 %v1217_v32 }
  0x17   :  { %927 = vmatprep.subr.bf16.mxu0 %v1101_v15 }
  0x18   :  { %900 = vmatmul.mubr.msk.f32.gmra.mrb[6].mxu0 %vm44_vm0, %v32_v13 }
  0x19   :  { %929 = vmatprep.mubr.msk.bf16.mxu0 %vm1100_vm1, %v1101_v15 }
  0x1a   :  { %928 = vmatpush3.bf16.msra.mxu0 %v1261_v4 }
  0x1b   :  { %933 = vmatprep.subr.bf16.mxu0 %v1101_v15 }
  0x88   :  { %v187_v5 = vpop.permute.xlu0 %186 }
  0xdf   :  { %v892_v34 = vpop.f32.mrb[0].mxu0 }
  0xe0   :  { %v141_v35 = vadd.f32 %v892_v34, %v783_v33  ;;  %v135_v36 = vpop.f32.mrb[1].mxu0 }
  0xe1   :  { %v136_v37 = vadd.f32 %v783_v33, %v135_v36 }
  0xe2   :  { %v175_v38 = vmax.f32 %v141_v35, 0.0 }
  0xe3   :  { %v174_v39 = vmax.f32 %v136_v37, 0.0  ;;  %v895_v40 = vpop.f32.mrb[2].mxu0 }
  0xe4   :  { %v151_v41 = vadd.f32 %v895_v40, %v783_v33  ;;  %v145_v42 = vpop.f32.mrb[3].mxu0 }
  0xe5   :  { %v1050_v44 = vpack.c.bf16 %v175_v38, %v174_v39  ;;  %v146_v45 = vadd.f32 %v783_v33, %v145_v42 }
  0xe6   :  { %v177_v46 = vmax.f32 %v151_v41, 0.0 }
  0xe7   :  { %v176_v47 = vmax.f32 %v146_v45, 0.0  ;;  %1052 = vmatpush3.bf16.xpose.msk.msra.mxu1 %vm1227_vm3, %v1050_v44  ;;  %v898_v48 = vpop.f32.mrb[4].mxu0 }
  0xe8   :  { %v161_v49 = vadd.f32 %v898_v48, %v783_v33  ;;  %1053 = vmatprep.subr.bf16.mxu1 %v1099_v14  ;;  %v155_v50 = vpop.f32.mrb[5].mxu0 }
  0xe9   :  { %v1054_v51 = vpack.c.bf16 %v177_v46, %v176_v47  ;;  %v156_v52 = vadd.f32 %v783_v33, %v155_v50 }
  0xea   :  { %v179_v53 = vmax.f32 %v161_v49, 0.0 }
  0xeb   :  { %v178_v54 = vmax.f32 %v156_v52, 0.0  ;;  %v901_v55 = vpop.f32.mrb[6].mxu0 }
  0xec   :  { %v171_v56 = vadd.f32 %v901_v55, %v783_v33  ;;  %v165_v57 = vpop.f32.mrb[7].mxu0 }
  0xed   :  { %v1058_v58 = vpack.c.bf16 %v179_v53, %v178_v54  ;;  %v166_v59 = vadd.f32 %v783_v33, %v165_v57 }
  0xee   :  { %v181_v60 = vmax.f32 %v171_v56, 0.0 }
  0xef   :  { %1056 = vmatpush3.bf16.xpose.msk.msra.mxu1 %vm1227_vm3, %v1054_v51  ;;  %v180_v61 = vmax.f32 %v166_v59, 0.0 }
  0xf0   :  { %1057 = vmatprep.subr.bf16.mxu1 %v1099_v14 }
  0xf1   :  { %v1062_v62 = vpack.c.bf16 %v181_v60, %v180_v61 }
  0xf7   :  { %1060 = vmatpush3.bf16.xpose.msk.msra.mxu1 %vm1227_vm3, %v1058_v58 }
  0xf8   :  { %1061 = vmatprep.subr.bf16.mxu1 %v1099_v14 }
  0xff   :  { %1064 = vmatpush3.bf16.xpose.msk.msra.mxu1 %vm1227_vm3, %v1062_v62 }
 0x100   :  { %945 = vmatprep.subr.bf16.mxu1 %v1101_v15 }
 0x106   :  { %919 = vmatmul.mubr.msk.f32.vlgmr.msra.gmra.mrb[0].mxu1 %vm189_vm2, %v182_v63 }
 0x107   :  { %946 = vmatpush3.bf16.msra.mxu1 %v1210_v28  ;;  %953 = vmatprep.mubr.msk.bf16.mxu1 %vm1100_vm1, %v1101_v15 }
 0x108   :  { %947 = vmatprep.subr.bf16.mxu1 %v1101_v15 }
 0x10b   :  { %948 = vmatpush3.bf16.msra.mxu1 %v1213_v29 }
 0x10c   :  { %949 = vmatprep.subr.bf16.mxu1 %v1101_v15 }
 0x10f   :  { %950 = vmatpush3.bf16.msra.mxu1 %v1217_v32 }
 0x110   :  { %951 = vmatprep.subr.bf16.mxu1 %v1101_v15 }
 0x113   :  { %952 = vmatpush3.bf16.msra.mxu1 %v1261_v4 }
 0x114   :  { %969 = vmatprep.subr.bf16.mxu1 %v1101_v15 }
 0x1d9   :  { %v283_v6 = vpop.f32.mrb[0].mxu1 }
 0x1da   :  { %v284_v7 = vadd.f32 %v283_v6, %v187_v5  ;;  %v920_v8 = vpop.f32.mrb[1].mxu1 }
 0x1dc   :  { %v308_v9 = vpack.c.bf16 %v284_v7, %v284_v7  ;;  %v1278_v10 = vmul.f32 0.1, %v284_v7 }
 0x1de   :  { %930 = vmatmul.mubr.msk.bf16.vlgmr.msra.gmra.mrb[8].mxu0 %vm189_vm2, %v308_v9 }
 0x1df   :  { %934 = vmatpush3.bf16.msra.mxu0 %v1210_v28  ;;  %941 = vmatprep.mubr.msk.bf16.mxu0 %vm1100_vm1, %v1101_v15 }
 0x1e0   :  { %935 = vmatprep.subr.bf16.mxu0 %v1101_v15 }
 0x1e3   :  { %936 = vmatpush3.bf16.msra.mxu0 %v1213_v29 }
 0x1e4   :  { %937 = vmatprep.subr.bf16.mxu0 %v1101_v15 }
 0x1e7   :  { %938 = vmatpush3.bf16.msra.mxu0 %v1217_v32 }
 0x1e8   :  { %939 = vmatprep.subr.bf16.mxu0 %v1101_v15 }
 0x1eb   :  { %940 = vmatpush3.bf16.msra.mxu0 %v1261_v4 }
 0x1ec   :  { %957 = vmatprep.subr.bf16.mxu0 %v1101_v15 }
 0x2b1   :  { %v346_v11 = vpop.f32.mrb[8].mxu0 }
 0x2b2   :  { %v347_v12 = vadd.f32 %v346_v11, %v1278_v10  ;;  %v931_v13 = vpop.f32.mrb[9].mxu0 }
 0x2b3   :  { %v349_v14 = vpop.f32.mrb[10].mxu0 }
 0x2b4   :  { %v352_v16 = vpack.c.bf16 %v347_v12, %v347_v12  ;;  %v932_v17 = vpop.f32.mrb[11].mxu0 }
 0x2b6   :  { %942 = vmatmul.mubr.msk.bf16.vlgmr.msra.gmra.mrb[12].mxu0 %vm189_vm2, %v352_v16 }
 0x2b7   :  { %958 = vmatpush3.bf16.msra.mxu0 %v1210_v28  ;;  %965 = vmatprep.mubr.msk.bf16.mxu0 %vm1100_vm1, %v1101_v15 }
 0x2b8   :  { %959 = vmatprep.subr.bf16.mxu0 %v1101_v15 }
 0x2bb   :  { %960 = vmatpush3.bf16.msra.mxu0 %v1213_v29 }
 0x2bc   :  { %961 = vmatprep.subr.bf16.mxu0 %v1101_v15 }
 0x2bf   :  { %962 = vmatpush3.bf16.msra.mxu0 %v1217_v32 }
 0x2c0   :  { %963 = vmatprep.subr.bf16.mxu0 %v1101_v15 }
 0x2c3   :  { %964 = vmatpush3.bf16.msra.mxu0 %v1261_v4 }
 0x2c4   :  { %981 = vmatprep.subr.bf16.mxu0 %v1101_v15 }
 0x389   :  { %v390_v18 = vpop.f32.mrb[12].mxu0 }
 0x38a   :  { %v391_v19 = vadd.f32 %v390_v18, %v1278_v10  ;;  %v943_v20 = vpop.f32.mrb[13].mxu0 }
 0x38b   :  { %v393_v21 = vpop.f32.mrb[14].mxu0 }
 0x38c   :  { %v396_v22 = vpack.c.bf16 %v391_v19, %v391_v19  ;;  %v944_v23 = vpop.f32.mrb[15].mxu0 }
 0x38e   :  { %954 = vmatmul.mubr.msk.bf16.vlgmr.msra.gmra.mrb[4].mxu1 %vm189_vm2, %v396_v22 }
 0x38f   :  { %970 = vmatpush3.bf16.msra.mxu1 %v1210_v28  ;;  %977 = vmatprep.mubr.msk.bf16.mxu1 %vm1100_vm1, %v1101_v15 }
 0x390   :  { %971 = vmatprep.subr.bf16.mxu1 %v1101_v15 }
 0x393   :  { %972 = vmatpush3.bf16.msra.mxu1 %v1213_v29 }
 0x394   :  { %973 = vmatprep.subr.bf16.mxu1 %v1101_v15 }
 0x397   :  { %974 = vmatpush3.bf16.msra.mxu1 %v1217_v32 }
 0x398   :  { %975 = vmatprep.subr.bf16.mxu1 %v1101_v15 }
 0x39b   :  { %976 = vmatpush3.bf16.msra.mxu1 %v1261_v4 }
 0x39c   :  { %993 = vmatprep.subr.bf16.mxu1 %v1101_v15 }
 0x461   :  { %v434_v24 = vpop.f32.mrb[4].mxu1 }
 0x462   :  { %v435_v25 = vadd.f32 %v434_v24, %v1278_v10  ;;  %v955_v26 = vpop.f32.mrb[5].mxu1 }
 0x463   :  { %v437_v27 = vpop.f32.mrb[6].mxu1 }
 0x464   :  { %v440_v30 = vpack.c.bf16 %v435_v25, %v435_v25  ;;  %v956_v31 = vpop.f32.mrb[7].mxu1 }
 0x466   :  { %966 = vmatmul.mubr.msk.bf16.vlgmr.msra.gmra.mrb[16].mxu0 %vm189_vm2, %v440_v30 }
 0x467   :  { %982 = vmatpush3.bf16.msra.mxu0 %v1210_v28  ;;  %989 = vmatprep.mubr.msk.bf16.mxu0 %vm1100_vm1, %v1101_v15 }
 0x468   :  { %983 = vmatprep.subr.bf16.mxu0 %v1101_v15 }
 0x46b   :  { %984 = vmatpush3.bf16.msra.mxu0 %v1213_v29 }
 0x46c   :  { %985 = vmatprep.subr.bf16.mxu0 %v1101_v15 }
 0x46f   :  { %986 = vmatpush3.bf16.msra.mxu0 %v1217_v32 }
 0x470   :  { %987 = vmatprep.subr.bf16.mxu0 %v1101_v15 }
 0x473   :  { %988 = vmatpush3.bf16.msra.mxu0 %v1261_v4 }
 0x474   :  { %1005 = vmatprep.subr.bf16.mxu0 %v1101_v15 }
 0x539   :  { %v478_v33 = vpop.f32.mrb[16].mxu0 }
 0x53a   :  { %v479_v34 = vadd.f32 %v478_v33, %v1278_v10  ;;  %v967_v35 = vpop.f32.mrb[17].mxu0 }
 0x53b   :  { %v481_v36 = vpop.f32.mrb[18].mxu0 }
 0x53c   :  { %v484_v37 = vpack.c.bf16 %v479_v34, %v479_v34  ;;  %v968_v38 = vpop.f32.mrb[19].mxu0 }
 0x53e   :  { %978 = vmatmul.mubr.msk.bf16.vlgmr.msra.gmra.mrb[8].mxu1 %vm189_vm2, %v484_v37 }
 0x53f   :  { %994 = vmatpush3.bf16.msra.mxu1 %v1210_v28  ;;  %1001 = vmatprep.mubr.msk.bf16.mxu1 %vm1100_vm1, %v1101_v15 }
 0x540   :  { %995 = vmatprep.subr.bf16.mxu1 %v1101_v15 }
 0x543   :  { %996 = vmatpush3.bf16.msra.mxu1 %v1213_v29 }
 0x544   :  { %997 = vmatprep.subr.bf16.mxu1 %v1101_v15 }
 0x547   :  { %998 = vmatpush3.bf16.msra.mxu1 %v1217_v32 }
 0x548   :  { %999 = vmatprep.subr.bf16.mxu1 %v1101_v15 }
 0x54b   :  { %1000 = vmatpush3.bf16.msra.mxu1 %v1261_v4 }
 0x54c   :  { %1017 = vmatprep.subr.bf16.mxu1 %v1101_v15 }
 0x611   :  { %v522_v39 = vpop.f32.mrb[8].mxu1 }
 0x612   :  { %v523_v40 = vadd.f32 %v522_v39, %v1278_v10  ;;  %v979_v41 = vpop.f32.mrb[9].mxu1 }
 0x613   :  { %v525_v42 = vpop.f32.mrb[10].mxu1 }
 0x614   :  { %v528_v43 = vpack.c.bf16 %v523_v40, %v523_v40  ;;  %v980_v44 = vpop.f32.mrb[11].mxu1 }
 0x616   :  { %990 = vmatmul.mubr.msk.bf16.vlgmr.msra.gmra.mrb[20].mxu0 %vm189_vm2, %v528_v43 }
 0x617   :  { %1006 = vmatpush3.bf16.msra.mxu0 %v1210_v28  ;;  %1013 = vmatprep.mubr.msk.bf16.mxu0 %vm1100_vm1, %v1101_v15 }
 0x618   :  { %1007 = vmatprep.subr.bf16.mxu0 %v1101_v15 }
 0x61b   :  { %1008 = vmatpush3.bf16.msra.mxu0 %v1213_v29 }
 0x61c   :  { %1009 = vmatprep.subr.bf16.mxu0 %v1101_v15 }
 0x61f   :  { %1010 = vmatpush3.bf16.msra.mxu0 %v1217_v32 }
 0x620   :  { %1011 = vmatprep.subr.bf16.mxu0 %v1101_v15 }
 0x623   :  { %1012 = vmatpush3.bf16.msra.mxu0 %v1261_v4 }
 0x624   :  { %1029 = vmatprep.subr.bf16.mxu0 %v1101_v15 }
 0x6e9   :  { %v566_v45 = vpop.f32.mrb[20].mxu0 }
 0x6ea   :  { %v567_v46 = vadd.f32 %v566_v45, %v1278_v10  ;;  %v991_v47 = vpop.f32.mrb[21].mxu0 }
 0x6eb   :  { %v569_v48 = vpop.f32.mrb[22].mxu0 }
 0x6ec   :  { %v572_v49 = vpack.c.bf16 %v567_v46, %v567_v46  ;;  %v992_v50 = vpop.f32.mrb[23].mxu0 }
 0x6ee   :  { %1002 = vmatmul.mubr.msk.bf16.vlgmr.msra.gmra.mrb[12].mxu1 %vm189_vm2, %v572_v49 }
 0x6ef   :  { %1018 = vmatpush3.bf16.msra.mxu1 %v1210_v28  ;;  %1025 = vmatprep.mubr.msk.bf16.mxu1 %vm1100_vm1, %v1101_v15 }
 0x6f0   :  { %1019 = vmatprep.subr.bf16.mxu1 %v1101_v15 }
 0x6f3   :  { %1020 = vmatpush3.bf16.msra.mxu1 %v1213_v29 }
 0x6f4   :  { %1021 = vmatprep.subr.bf16.mxu1 %v1101_v15 }
 0x6f7   :  { %1022 = vmatpush3.bf16.msra.mxu1 %v1217_v32 }
 0x6f8   :  { %1023 = vmatprep.subr.bf16.mxu1 %v1101_v15 }
 0x6fb   :  { %1024 = vmatpush3.bf16.msra.mxu1 %v1261_v4 }
 0x7c1   :  { %v610_v51 = vpop.f32.mrb[12].mxu1 }
 0x7c2   :  { %v611_v52 = vadd.f32 %v610_v51, %v1278_v10  ;;  %v1003_v53 = vpop.f32.mrb[13].mxu1 }
 0x7c3   :  { %v613_v54 = vpop.f32.mrb[14].mxu1 }
 0x7c4   :  { %v616_v55 = vpack.c.bf16 %v611_v52, %v611_v52  ;;  %v1004_v56 = vpop.f32.mrb[15].mxu1 }
 0x7c6   :  { %1014 = vmatmul.mubr.msk.bf16.vlgmr.msra.gmra.mrb[24].mxu0 %vm189_vm2, %v616_v55 }
 0x7c7   :  { %1030 = vmatpush3.bf16.msra.mxu0 %v1210_v28  ;;  %1037 = vmatprep.mubr.msk.bf16.mxu0 %vm1100_vm1, %v1101_v15 }
 0x7c8   :  { %1031 = vmatprep.subr.bf16.mxu0 %v1101_v15 }
 0x7cb   :  { %1032 = vmatpush3.bf16.msra.mxu0 %v1213_v29 }
 0x7cc   :  { %1033 = vmatprep.subr.bf16.mxu0 %v1101_v15 }
 0x7cf   :  { %1034 = vmatpush3.bf16.msra.mxu0 %v1217_v32 }
 0x7d0   :  { %1035 = vmatprep.subr.bf16.mxu0 %v1101_v15 }
 0x7d3   :  { %1036 = vmatpush3.bf16.msra.mxu0 %v1261_v4 }
 0x899   :  { %v654_v57 = vpop.f32.mrb[24].mxu0 }
 0x89a   :  { %v655_v58 = vadd.f32 %v654_v57, %v1278_v10  ;;  %v1015_v59 = vpop.f32.mrb[25].mxu0 }
 0x89b   :  { %v657_v28 = vpop.f32.mrb[26].mxu0 }
 0x89c   :  { %v660_v60 = vpack.c.bf16 %v655_v58, %v655_v58  ;;  %v1016_v61 = vpop.f32.mrb[27].mxu0 }
 0x89e   :  { %1026 = vmatmul.mubr.msk.bf16.vlgmr.msra.gmra.mrb[16].mxu1 %vm189_vm2, %v660_v60 }
 0x971   :  { %v698_v62 = vpop.f32.mrb[16].mxu1 }
 0x972   :  { %v699_v29 = vadd.f32 %v698_v62, %v1278_v10  ;;  %v1027_v63 = vpop.f32.mrb[17].mxu1 }
 0x973   :  { %v701_v0 = vpop.f32.mrb[18].mxu1 }
 0x974   :  { %v704_v1 = vpack.c.bf16 %v699_v29, %v699_v29  ;;  %v1028_v32 = vpop.f32.mrb[19].mxu1 }
 0x976   :  { %1038 = vmatmul.mubr.msk.bf16.vlgmr.msra.gmra.mrb[28].mxu0 %vm189_vm2, %v704_v1 }
 0xa49   :  { %v742_v15 = vpop.f32.mrb[28].mxu0 }
 0xa4a   :  { %v743_v2 = vadd.f32 %v742_v15, %v1278_v10  ;;  %v1039_v3 = vpop.f32.mrb[29].mxu0 }
 0xa4b   :  { %v745_v4 = vpop.f32.mrb[30].mxu0 }
 0xa4c   :  { %v748_v5 = vsel %vm189_vm2, %v743_v2, -inf  ;;  %v1040_v6 = vpop.f32.mrb[31].mxu0 }
 0xa4d   :  { %v749_v7 = vrot.slane %v748_v5, 4 }
 0xa4f   :  { %v750_v8 = vmax.f32 %v748_v5, %v749_v7 }
 0xa51   :  { %v751_v9 = vrot.slane %v750_v8, 2 }
 0xa53   :  { %v752_v11 = vmax.f32 %v750_v8, %v751_v9 }
 0xa55   :  { %v753_v12 = vrot.slane %v752_v11, 1 }
 0xa57   :  { %v754_v13 = vmax.f32 %v752_v11, %v753_v12 }
 0xa59   :  { %v755_v14 = vsub.f32 %v743_v2, %v754_v13 }
 0xa5b   :  { %v756_v16 = vmul.f32 1.442695, %v755_v14 }
 0xa5d   :  { %1071 = vpow2.f32 %v756_v16 }
 0xa67   :  { %v1072_v17 = vpop.eup %1071 }
 0xa68   :  { %v758_v18 = vsel %vm189_vm2, %v1072_v17, 0.0 }
 0xa69   :  { %v759_v19 = vrot.slane %v758_v18, 4 }
 0xa6b   :  { %v760_v20 = vadd.f32 %v759_v19, %v758_v18 }
 0xa6d   :  { %v761_v10 = vrot.slane %v760_v20, 2 }
 0xa6f   :  { %v762_v21 = vadd.f32 %v761_v10, %v760_v20 }
 0xa71   :  { %v763_v22 = vrot.slane %v762_v21, 1 }
 0xa73   :  { %v764_v23 = vadd.f32 %v763_v22, %v762_v21 }
 0xa75   :  { %1073 = vlog2.f32 %v764_v23 }
 0xa7f   :  { %v1074_v24 = vpop.eup %1073 }
 0xa80   :  { %v766_v25 = vmul.f32 0.6931472, %v1074_v24 }
 0xa82   :  { %v767_v26 = vsub.f32 %v755_v14, %v766_v25 }
 0xa84   :  { %768 = vst.msk [vmem:[#allocation2] sm:$0xff] %vm189_vm2, %v767_v26 }
 0xa85   :  { %1086 = shalt.err (!%p1083_p4)
}
 0xa86   :  { %s1087_s17 = scalar_lea.hbm %s1388_s6, 128 }
 0xa87   :  { %p1088_p5 = scmp.ne.s32.totalorder %s1388_s6, %s1087_s17  ;;  %p1091_p6 = scmp.lt.u32.totalorder %s1087_s17, %s1388_s6 }
 0xa89   :  { %p1093_p7 = pnand %p1091_p6, %p1088_p5 }
 0xa8b   :  { %1096 = shalt.err (!%p1093_p7)
}
 0xa8c   :  { %778 = dma.vmem_to_hbm [thread:$0]  %s776_s13, 128, %s1388_s6, [#allocation3]  }
 0xa8d   :  { %1097 = dma.done.wait [#allocation3], 128  }
 0xa8e   :  { %1098 = vsyncadd [#allocation3], 4294967168 }
 0xa8f   :  { %782 = vsyncpa [#allocation3], 1 }

</bundles_post_ra>
